<compile_context>
chip_gen: v7x
topology: tpu7x:2x2x1
jax: 0.10.0
libtpu: 0.0.40
codegen_flags: <defaults>
</compile_context>

<pallas_src>
import functools

import jax
import jax.numpy as jnp
from jax.experimental import pallas as pl
from jax.experimental.pallas import tpu as pltpu


def _round_up(v: int, m: int) -> int:
    return ((v + m - 1) // m) * m


def _padded_sizes(n_nodes: int, dims) -> tuple[int, int]:
    """Pad node count and the (common) feature dim to lane-friendly multiples."""
    dp = _round_up(max(dims), 128)
    np_ = _round_up(n_nodes, 128)
    return np_, dp


def _pick_row_tile(np_: int, dp: int) -> int:
    """Row tile for adj: the largest of {1024, 512, 256, 128} that divides Np
    and keeps the estimated VMEM working set (adj / x / W / scale / out double
    buffers + the two resident activation scratch buffers) under ~48 MiB."""
    if np_ <= 512:
        return np_
    fixed = (2 * np_ * dp * 2          # x double buffer (bf16)
             + 2 * np_ * dp * 2        # h0 + h1 scratch (bf16)
             + 2 * dp * dp * 2)        # W double buffer (bf16)
    for tm in (1024, 512, 256, 128):
        per_tile = (2 * tm * np_ * 2   # adj double buffer (bf16)
                    + 2 * tm * dp * 2  # dropout-scale double buffer (bf16)
                    + 2 * tm * dp * 4)  # out double buffer (f32)
        if np_ % tm == 0 and fixed + per_tile <= 48 * 1024 * 1024:
            return tm
    return 128


def _make_dropout_scales(key, n_layers: int, np_: int, dp: int, val_test: bool):
    """Inverted-dropout scales per hidden layer: 0.0 / 2.0 (p=0.5), ones in
    eval.  Last layer entry is all-ones (unused by the kernel).  Stored bf16."""
    if val_test or n_layers == 1:
        return jnp.ones((n_layers, np_, dp), jnp.bfloat16)
    keys = jax.random.split(key, n_layers - 1)
    scales = [
        jax.random.bernoulli(keys[ln], 0.5, (np_, dp)).astype(jnp.bfloat16) * 2.0
        for ln in range(n_layers - 1)
    ]
    scales.append(jnp.ones((np_, dp), jnp.bfloat16))
    return jnp.stack(scales, axis=0)


def _fused_gcn_kernel(adj_ref, x_ref, w_ref, scale_ref, out_ref, h0, h1, *, tm):
    l = pl.program_id(0)           # layer index (outer, strictly sequential)
    i = pl.program_id(1)           # adj row-tile index (inner)
    n_layers = pl.num_programs(0)

    # Seed the ping-pong activation buffer with the (padded) input features.
    @pl.when(jnp.logical_and(l == 0, i == 0))
    def _():
        h0[...] = x_ref[...]

    row0 = pl.multiple_of(i * tm, tm)   # aligned, unmasked scratch stores
    is_last = l == n_layers - 1

    def layer_step(src_ref, dst_ref):
        # adj-tile @ h : (tm, Np) x (Np, Dp), bf16 operands, f32 MXU accumulate.
        prop = jnp.dot(adj_ref[...], src_ref[...],
                       preferred_element_type=jnp.float32)
        # (adj @ h) @ W : W already transposed to (Dp, Dp) in the wrapper,
        # so no in-kernel transpose is needed.
        y = jnp.dot(prop.astype(jnp.bfloat16), w_ref[0],
                    preferred_element_type=jnp.float32)

        @pl.when(is_last)
        def _():
            # Final layer: raw linear output, no scratch writeback needed.
            out_ref[...] = y.astype(out_ref.dtype)

        @pl.when(jnp.logical_not(is_last))
        def _():
            # Hidden layers: ReLU then one multiply by the inverted-dropout
            # scale (f32 elementwise; cast only at the stores).
            act = jnp.maximum(y, 0.0) * scale_ref[0].astype(jnp.float32)
            dst_ref[pl.ds(row0, tm), :] = act.astype(dst_ref.dtype)
            out_ref[...] = act.astype(out_ref.dtype)

    @pl.when(l % 2 == 0)
    def _():
        layer_step(h0, h1)

    @pl.when(l % 2 == 1)
    def _():
        layer_step(h1, h0)


@jax.jit
def _fused_gcn_call(adj_p, x_p, w_p, scales_p):
    n_layers, dp, _ = w_p.shape
    np_ = adj_p.shape[0]
    tm = _pick_row_tile(np_, dp)
    n_tiles = np_ // tm
    grid = (n_layers, n_tiles)

    flops = n_layers * (2 * np_ * np_ * dp + 2 * np_ * dp * dp)
    bytes_accessed = (n_layers * np_ * np_ * 2      # adj (bf16), per-layer when tiled
                      + np_ * dp * 2                # input features
                      + n_layers * dp * dp * 2      # weights
                      + n_layers * np_ * dp * 2     # dropout scales (bf16)
                      + n_layers * np_ * dp * 4)    # output writebacks

    vmem_needed = (2 * tm * np_ * 2        # adj double buffer (bf16)
                   + 2 * np_ * dp * 2      # x double buffer (bf16)
                   + 2 * dp * dp * 2       # W double buffer (bf16)
                   + 2 * tm * dp * 2       # dropout-scale double buffer (bf16)
                   + 2 * tm * dp * 4       # out double buffer (f32)
                   + 2 * np_ * dp * 2)     # h0 + h1 scratch (bf16)
    vmem_limit = int(min(64 * 1024 * 1024,
                         max(16 * 1024 * 1024, 2 * vmem_needed)))

    kernel = functools.partial(_fused_gcn_kernel, tm=tm)
    return pl.pallas_call(
        kernel,
        out_shape=jax.ShapeDtypeStruct((np_, dp), jnp.float32),
        grid_spec=pltpu.PrefetchScalarGridSpec(
            num_scalar_prefetch=0,
            grid=grid,
            in_specs=[
                pl.BlockSpec((tm, np_), lambda l, i: (i, 0)),       # adj row tile
                pl.BlockSpec((np_, dp), lambda l, i: (0, 0)),       # input features
                pl.BlockSpec((1, dp, dp), lambda l, i: (l, 0, 0)),  # stacked W^T
                pl.BlockSpec((1, tm, dp), lambda l, i: (l, i, 0)),  # dropout scales
            ],
            out_specs=pl.BlockSpec((tm, dp), lambda l, i: (i, 0)),
            scratch_shapes=[
                pltpu.VMEM((np_, dp), jnp.bfloat16),   # ping
                pltpu.VMEM((np_, dp), jnp.bfloat16),   # pong
            ],
        ),
        compiler_params=pltpu.CompilerParams(
            # Layer axis is a true sequential dependency; the row axis
            # cooperatively fills the shared VMEM activation scratch read by
            # the next layer, so it must not be sharded across cores either.
            dimension_semantics=("arbitrary", "arbitrary"),
            vmem_limit_bytes=vmem_limit,
        ),
        cost_estimate=pl.CostEstimate(
            flops=int(flops), transcendentals=0,
            bytes_accessed=int(bytes_accessed)),
    )(adj_p, x_p, w_p, scales_p)


def init_net_gcn_params(key, embedding_dim):
    """Matches torch.nn.Linear(bias=False) default init:
    U(-1/sqrt(fan_in), 1/sqrt(fan_in)), weight shape (d_out, d_in)."""
    weights = []
    for ln in range(len(embedding_dim) - 1):
        key, sub = jax.random.split(key)
        fan_in, fan_out = embedding_dim[ln], embedding_dim[ln + 1]
        bound = 1.0 / jnp.sqrt(jnp.float32(fan_in))
        w = jax.random.uniform(
            sub, (fan_out, fan_in), dtype=jnp.float32, minval=-bound, maxval=bound
        )
        weights.append(w)
    return weights


def net_gcn_forward(x, adj, weights, val_test=False, rng_key=None):
    """Mirrors net_gcn.forward with all layers fused into one pallas_call."""
    n_nodes, d_in = x.shape
    n_layers = len(weights)
    dims = [d_in] + [int(w.shape[0]) for w in weights]
    np_, dp = _padded_sizes(n_nodes, dims)

    # Pad + cast once in HBM (bf16 halves adj traffic; accumulation stays f32).
    adj_p = jnp.zeros((np_, np_), jnp.bfloat16).at[:n_nodes, :n_nodes].set(
        adj.astype(jnp.bfloat16))
    x_p = jnp.zeros((np_, dp), jnp.bfloat16).at[:n_nodes, :d_in].set(
        x.astype(jnp.bfloat16))
    w_p = jnp.zeros((n_layers, dp, dp), jnp.bfloat16)
    for ln, w in enumerate(weights):
        # Pre-transpose: torch weight is (d_out, d_in) -> store (d_in, d_out).
        w_p = w_p.at[ln, : w.shape[1], : w.shape[0]].set(w.T.astype(jnp.bfloat16))

    if rng_key is None:
        rng_key = jax.random.PRNGKey(0)
    scales_p = _make_dropout_scales(rng_key, n_layers, np_, dp, val_test)

    out_p = _fused_gcn_call(adj_p, x_p, w_p, scales_p)
    return out_p[:n_nodes, : dims[-1]]


if __name__ == "__main__":
    key = jax.random.PRNGKey(0)
    k_adj, k_x, k_w, k_drop = jax.random.split(key, 4)

    # Small graph: N nodes, embedding_dim = [in, hidden, out] -> 2 GCN layers.
    n_nodes = 64
    embedding_dim = [32, 48, 16]

    # Dense symmetric adjacency with self loops, row-normalized.
    a = (jax.random.uniform(k_adj, (n_nodes, n_nodes)) < 0.1).astype(jnp.float32)
    a = jnp.maximum(a, a.T) + jnp.eye(n_nodes, dtype=jnp.float32)
    adj = a / jnp.sum(a, axis=1, keepdims=True)

    x = jax.random.normal(k_x, (n_nodes, embedding_dim[0]), dtype=jnp.float32)
    weights = init_net_gcn_params(k_w, embedding_dim)

    # Eval path (val_test=True): no dropout.
    out_eval = jax.block_until_ready(
        net_gcn_forward(x, adj, weights, val_test=True))

    # Training path (val_test=False): dropout via precomputed scales.
    out_train = jax.block_until_ready(
        net_gcn_forward(x, adj, weights, val_test=False, rng_key=k_drop))

    # f32 references (kernel uses bf16 matmul operands -> loose tolerance).
    n_layers = len(weights)
    dims = [embedding_dim[0]] + [int(w.shape[0]) for w in weights]
    np_, dp = _padded_sizes(n_nodes, dims)
    scales = _make_dropout_scales(k_drop, n_layers, np_, dp, val_test=False)
    scales = scales.astype(jnp.float32)

    ref_e, ref_t = x, x
    for ln, w in enumerate(weights):
        ref_e = (adj @ ref_e) @ w.T
        ref_t = (adj @ ref_t) @ w.T
        if ln != n_layers - 1:
            ref_e = jnp.maximum(ref_e, 0.0)
            ref_t = jnp.maximum(ref_t, 0.0) * scales[ln, :n_nodes, : w.shape[0]]

    assert out_eval.shape == (n_nodes, embedding_dim[-1])
    assert out_train.shape == (n_nodes, embedding_dim[-1])
    assert bool(jnp.all(jnp.isfinite(out_eval)))
    assert bool(jnp.all(jnp.isfinite(out_train)))
    assert bool(jnp.allclose(out_eval, ref_e, atol=5e-2, rtol=5e-2))
    assert bool(jnp.allclose(out_train, ref_t, atol=5e-2, rtol=5e-2))

    print("KERNEL_OK")
</pallas_src>

<mosaic_0001>
module attributes {stable_mosaic.version = 11 : i64} {
  func.func @_fused_gcn_kernel(%arg0: i32, %arg1: i32, %arg2: memref<128x128xbf16, #tpu.memory_space<vmem>>, %arg3: memref<128x128xbf16, #tpu.memory_space<vmem>>, %arg4: memref<1x128x128xbf16, #tpu.memory_space<vmem>>, %arg5: memref<1x128x128xbf16, #tpu.memory_space<vmem>>, %arg6: memref<128x128xf32, #tpu.memory_space<vmem>>, %arg7: memref<128x128xbf16, #tpu.memory_space<vmem>>, %arg8: memref<128x128xbf16, #tpu.memory_space<vmem>>) attributes {dimension_semantics = [#tpu.dimension_semantics<arbitrary>, #tpu.dimension_semantics<arbitrary>], iteration_bounds = array<i64: 2, 1>, scalar_prefetch = 0 : i64, scratch_operands = 2 : i64, tpu.core_type = #tpu.core_type<tc>, window_params = [{transform_indices = @transform_0, window_bounds = array<i64: 128, 128>}, {pipeline_mode = #tpu.pipeline_mode<synchronous>, transform_indices = @transform_1, window_bounds = array<i64: 128, 128>}, {transform_indices = @transform_2, window_bounds = array<i64: 1, 128, 128>}, {transform_indices = @transform_3, window_bounds = array<i64: 1, 128, 128>}, {transform_indices = @transform_4, window_bounds = array<i64: 128, 128>}]} {
    %c0_i32 = arith.constant 0 : i32
    %0 = arith.cmpi eq, %arg0, %c0_i32 : i32
    %c0_i32_0 = arith.constant 0 : i32
    %1 = arith.cmpi eq, %arg1, %c0_i32_0 : i32
    %2 = arith.andi %0, %1 : i1
    %3 = arith.extui %2 : i1 to i32
    %c0_i32_1 = arith.constant 0 : i32
    %4 = arith.cmpi ne, %3, %c0_i32_1 : i32
    scf.if %4 {
      %c0 = arith.constant 0 : index
      %c0_17 = arith.constant 0 : index
      %34 = vector.load %arg3[%c0, %c0_17] : memref<128x128xbf16, #tpu.memory_space<vmem>>, vector<128x128xbf16>
      %c0_18 = arith.constant 0 : index
      %c0_19 = arith.constant 0 : index
      %35 = vector.load %arg7[%c0_18, %c0_19] : memref<128x128xbf16, #tpu.memory_space<vmem>>, vector<128x128xbf16>
      tpu.vector_store %arg7[%c0_18, %c0_19], %34 {strides = array<i32>} : memref<128x128xbf16, #tpu.memory_space<vmem>>, vector<128x128xbf16>,
    } else {
    }
    %c128_i32 = arith.constant 128 : i32
    %5 = arith.muli %arg1, %c128_i32 : i32
    %6 = tpu.assume_multiple %5, 128 : i32
    %c1_i32 = arith.constant 1 : i32
    %7 = arith.cmpi eq, %arg0, %c1_i32 : i32
    %c2_i32 = arith.constant 2 : i32
    %c0_i32_2 = arith.constant 0 : i32
    %8 = arith.cmpi eq, %c2_i32, %c0_i32_2 : i32
    %c1_i32_3 = arith.constant 1 : i32
    %9 = arith.select %8, %c1_i32_3, %c2_i32 : i32
    %10 = arith.remsi %arg0, %9 : i32
    %c0_i32_4 = arith.constant 0 : i32
    %11 = arith.cmpi ne, %10, %c0_i32_4 : i32
    %c0_i32_5 = arith.constant 0 : i32
    %12 = arith.cmpi slt, %10, %c0_i32_5 : i32
    %c0_i32_6 = arith.constant 0 : i32
    %13 = arith.cmpi slt, %9, %c0_i32_6 : i32
    %14 = arith.xori %12, %13 : i1
    %15 = arith.andi %14, %11 : i1
    %16 = arith.addi %10, %9 : i32
    %17 = arith.select %15, %16, %10 : i32
    %c0_i32_7 = arith.constant 0 : i32
    %18 = arith.cmpi eq, %17, %c0_i32_7 : i32
    %19 = arith.extui %18 : i1 to i32
    %c0_i32_8 = arith.constant 0 : i32
    %20 = arith.cmpi ne, %19, %c0_i32_8 : i32
    scf.if %20 {
      %c0 = arith.constant 0 : index
      %c0_17 = arith.constant 0 : index
      %34 = vector.load %arg2[%c0, %c0_17] : memref<128x128xbf16, #tpu.memory_space<vmem>>, vector<128x128xbf16>
      %c0_18 = arith.constant 0 : index
      %c0_19 = arith.constant 0 : index
      %35 = vector.load %arg7[%c0_18, %c0_19] : memref<128x128xbf16, #tpu.memory_space<vmem>>, vector<128x128xbf16>
      %cst = arith.constant dense<0.000000e+00> : vector<128x128xf32>
      %36 = tpu.matmul %34, %35, %cst {dimension_numbers = #tpu.dot_dimension_numbers<[1], [0], [0], [1], [0, 0, 1, 1], [], []>} : vector<128x128xbf16>, vector<128x128xbf16>, vector<128x128xf32> -> vector<128x128xf32>
      %37 = arith.truncf %36 : vector<128x128xf32> to vector<128x128xbf16>
      %c0_20 = arith.constant 0 : index
      %c0_21 = arith.constant 0 : index
      %c0_22 = arith.constant 0 : index
      %38 = vector.load %arg4[%c0_20, %c0_21, %c0_22] : memref<1x128x128xbf16, #tpu.memory_space<vmem>>, vector<1x128x128xbf16>
      %39 = vector.shape_cast %38 : vector<1x128x128xbf16> to vector<128x128xbf16>
      %cst_23 = arith.constant dense<0.000000e+00> : vector<128x128xf32>
      %40 = tpu.matmul %37, %39, %cst_23 {dimension_numbers = #tpu.dot_dimension_numbers<[1], [0], [0], [1], [0, 0, 1, 1], [], []>} : vector<128x128xbf16>, vector<128x128xbf16>, vector<128x128xf32> -> vector<128x128xf32>
      %41 = arith.extui %7 : i1 to i32
      %c0_i32_24 = arith.constant 0 : i32
      %42 = arith.cmpi ne, %41, %c0_i32_24 : i32
      scf.if %42 {
        %c0_26 = arith.constant 0 : index
        %c0_27 = arith.constant 0 : index
        %46 = vector.load %arg6[%c0_26, %c0_27] : memref<128x128xf32, #tpu.memory_space<vmem>>, vector<128x128xf32>
        tpu.vector_store %arg6[%c0_26, %c0_27], %40 {strides = array<i32>} : memref<128x128xf32, #tpu.memory_space<vmem>>, vector<128x128xf32>,
      } else {
      }
      %true = arith.constant true
      %43 = arith.xori %7, %true : i1
      %44 = arith.extui %43 : i1 to i32
      %c0_i32_25 = arith.constant 0 : i32
      %45 = arith.cmpi ne, %44, %c0_i32_25 : i32
      scf.if %45 {
        %cst_26 = arith.constant 0.000000e+00 : f32
        %46 = vector.broadcast %cst_26 : f32 to vector<128x128xf32>
        %47 = arith.maximumf %40, %46 : vector<128x128xf32>
        %c0_27 = arith.constant 0 : index
        %c0_28 = arith.constant 0 : index
        %c0_29 = arith.constant 0 : index
        %48 = vector.load %arg5[%c0_27, %c0_28, %c0_29] : memref<1x128x128xbf16, #tpu.memory_space<vmem>>, vector<1x128x128xbf16>
        %49 = vector.shape_cast %48 : vector<1x128x128xbf16> to vector<128x128xbf16>
        %50 = arith.extf %49 : vector<128x128xbf16> to vector<128x128xf32>
        %51 = arith.mulf %47, %50 : vector<128x128xf32>
        %52 = arith.truncf %51 : vector<128x128xf32> to vector<128x128xbf16>
        %53 = arith.index_cast %6 : i32 to index
        %c0_30 = arith.constant 0 : index
        %54 = vector.load %arg8[%53, %c0_30] : memref<128x128xbf16, #tpu.memory_space<vmem>>, vector<128x128xbf16>
        tpu.vector_store %arg8[%53, %c0_30], %52 {strides = array<i32>} : memref<128x128xbf16, #tpu.memory_space<vmem>>, vector<128x128xbf16>,
        %c0_31 = arith.constant 0 : index
        %c0_32 = arith.constant 0 : index
        %55 = vector.load %arg6[%c0_31, %c0_32] : memref<128x128xf32, #tpu.memory_space<vmem>>, vector<128x128xf32>
        tpu.vector_store %arg6[%c0_31, %c0_32], %51 {strides = array<i32>} : memref<128x128xf32, #tpu.memory_space<vmem>>, vector<128x128xf32>,
      } else {
      }
    } else {
    }
    %c2_i32_9 = arith.constant 2 : i32
    %c0_i32_10 = arith.constant 0 : i32
    %21 = arith.cmpi eq, %c2_i32_9, %c0_i32_10 : i32
    %c1_i32_11 = arith.constant 1 : i32
    %22 = arith.select %21, %c1_i32_11, %c2_i32_9 : i32
    %23 = arith.remsi %arg0, %22 : i32
    %c0_i32_12 = arith.constant 0 : i32
    %24 = arith.cmpi ne, %23, %c0_i32_12 : i32
    %c0_i32_13 = arith.constant 0 : i32
    %25 = arith.cmpi slt, %23, %c0_i32_13 : i32
    %c0_i32_14 = arith.constant 0 : i32
    %26 = arith.cmpi slt, %22, %c0_i32_14 : i32
    %27 = arith.xori %25, %26 : i1
    %28 = arith.andi %27, %24 : i1
    %29 = arith.addi %23, %22 : i32
    %30 = arith.select %28, %29, %23 : i32
    %c1_i32_15 = arith.constant 1 : i32
    %31 = arith.cmpi eq, %30, %c1_i32_15 : i32
    %32 = arith.extui %31 : i1 to i32
    %c0_i32_16 = arith.constant 0 : i32
    %33 = arith.cmpi ne, %32, %c0_i32_16 : i32
    scf.if %33 {
      %c0 = arith.constant 0 : index
      %c0_17 = arith.constant 0 : index
      %34 = vector.load %arg2[%c0, %c0_17] : memref<128x128xbf16, #tpu.memory_space<vmem>>, vector<128x128xbf16>
      %c0_18 = arith.constant 0 : index
      %c0_19 = arith.constant 0 : index
      %35 = vector.load %arg8[%c0_18, %c0_19] : memref<128x128xbf16, #tpu.memory_space<vmem>>, vector<128x128xbf16>
      %cst = arith.constant dense<0.000000e+00> : vector<128x128xf32>
      %36 = tpu.matmul %34, %35, %cst {dimension_numbers = #tpu.dot_dimension_numbers<[1], [0], [0], [1], [0, 0, 1, 1], [], []>} : vector<128x128xbf16>, vector<128x128xbf16>, vector<128x128xf32> -> vector<128x128xf32>
      %37 = arith.truncf %36 : vector<128x128xf32> to vector<128x128xbf16>
      %c0_20 = arith.constant 0 : index
      %c0_21 = arith.constant 0 : index
      %c0_22 = arith.constant 0 : index
      %38 = vector.load %arg4[%c0_20, %c0_21, %c0_22] : memref<1x128x128xbf16, #tpu.memory_space<vmem>>, vector<1x128x128xbf16>
      %39 = vector.shape_cast %38 : vector<1x128x128xbf16> to vector<128x128xbf16>
      %cst_23 = arith.constant dense<0.000000e+00> : vector<128x128xf32>
      %40 = tpu.matmul %37, %39, %cst_23 {dimension_numbers = #tpu.dot_dimension_numbers<[1], [0], [0], [1], [0, 0, 1, 1], [], []>} : vector<128x128xbf16>, vector<128x128xbf16>, vector<128x128xf32> -> vector<128x128xf32>
      %41 = arith.extui %7 : i1 to i32
      %c0_i32_24 = arith.constant 0 : i32
      %42 = arith.cmpi ne, %41, %c0_i32_24 : i32
      scf.if %42 {
        %c0_26 = arith.constant 0 : index
        %c0_27 = arith.constant 0 : index
        %46 = vector.load %arg6[%c0_26, %c0_27] : memref<128x128xf32, #tpu.memory_space<vmem>>, vector<128x128xf32>
        tpu.vector_store %arg6[%c0_26, %c0_27], %40 {strides = array<i32>} : memref<128x128xf32, #tpu.memory_space<vmem>>, vector<128x128xf32>,
      } else {
      }
      %true = arith.constant true
      %43 = arith.xori %7, %true : i1
      %44 = arith.extui %43 : i1 to i32
      %c0_i32_25 = arith.constant 0 : i32
      %45 = arith.cmpi ne, %44, %c0_i32_25 : i32
      scf.if %45 {
        %cst_26 = arith.constant 0.000000e+00 : f32
        %46 = vector.broadcast %cst_26 : f32 to vector<128x128xf32>
        %47 = arith.maximumf %40, %46 : vector<128x128xf32>
        %c0_27 = arith.constant 0 : index
        %c0_28 = arith.constant 0 : index
        %c0_29 = arith.constant 0 : index
        %48 = vector.load %arg5[%c0_27, %c0_28, %c0_29] : memref<1x128x128xbf16, #tpu.memory_space<vmem>>, vector<1x128x128xbf16>
        %49 = vector.shape_cast %48 : vector<1x128x128xbf16> to vector<128x128xbf16>
        %50 = arith.extf %49 : vector<128x128xbf16> to vector<128x128xf32>
        %51 = arith.mulf %47, %50 : vector<128x128xf32>
        %52 = arith.truncf %51 : vector<128x128xf32> to vector<128x128xbf16>
        %53 = arith.index_cast %6 : i32 to index
        %c0_30 = arith.constant 0 : index
        %54 = vector.load %arg7[%53, %c0_30] : memref<128x128xbf16, #tpu.memory_space<vmem>>, vector<128x128xbf16>
        tpu.vector_store %arg7[%53, %c0_30], %52 {strides = array<i32>} : memref<128x128xbf16, #tpu.memory_space<vmem>>, vector<128x128xbf16>,
        %c0_31 = arith.constant 0 : index
        %c0_32 = arith.constant 0 : index
        %55 = vector.load %arg6[%c0_31, %c0_32] : memref<128x128xf32, #tpu.memory_space<vmem>>, vector<128x128xf32>
        tpu.vector_store %arg6[%c0_31, %c0_32], %51 {strides = array<i32>} : memref<128x128xf32, #tpu.memory_space<vmem>>, vector<128x128xf32>,
      } else {
      }
    } else {
    }
    return
  }
  func.func @transform_0(%arg0: i32, %arg1: i32) -> (i32, i32) {
    %c0_i32 = arith.constant 0 : i32
    %c0_i32_0 = arith.constant 0 : i32
    return %arg1, %c0_i32 : i32, i32
  }
  func.func @transform_1(%arg0: i32, %arg1: i32) -> (i32, i32) {
    %c0_i32 = arith.constant 0 : i32
    %c0_i32_0 = arith.constant 0 : i32
    %c0_i32_1 = arith.constant 0 : i32
    return %c0_i32, %c0_i32_0 : i32, i32
  }
  func.func @transform_2(%arg0: i32, %arg1: i32) -> (i32, i32, i32) {
    %c0_i32 = arith.constant 0 : i32
    %c0_i32_0 = arith.constant 0 : i32
    %c0_i32_1 = arith.constant 0 : i32
    return %arg0, %c0_i32, %c0_i32_0 : i32, i32, i32
  }
  func.func @transform_3(%arg0: i32, %arg1: i32) -> (i32, i32, i32) {
    %c0_i32 = arith.constant 0 : i32
    %c0_i32_0 = arith.constant 0 : i32
    return %arg0, %arg1, %c0_i32 : i32, i32, i32
  }
  func.func @transform_4(%arg0: i32, %arg1: i32) -> (i32, i32) {
    %c0_i32 = arith.constant 0 : i32
    %c0_i32_0 = arith.constant 0 : i32
    return %arg1, %c0_i32 : i32, i32
  }
}

</mosaic_0001>

<bundles_post_ra>
// kernel: _fused_gcn_call.1
= control target key start
LH: loop header
LB: loop body
LE: loop exit
PB: predicated region body
PF: predicated region fallthrough
CT: control target
= control target key end

     0   :  { %s2547_s0 = inlined_call_operand.hbm [shape: bf16[128,128], index: 0, kind: input, shape index: {}]   ;;  %s2548_s1 = inlined_call_operand.hbm [shape: bf16[128,128], index: 1, kind: input, shape index: {}]   ;;  %s2549_s2 = inlined_call_operand.hbm [shape: bf16[2,128,128], index: 2, kind: input, shape index: {}]   ;;  %s2550_s3 = inlined_call_operand.hbm [shape: bf16[2,128,128], index: 3, kind: input, shape index: {}]   ;;  %s2551_s4 = inlined_call_operand.hbm [shape: f32[128,128], index: 4, kind: output, shape index: {}]  }
   0x1   :  { %2561 = sst [smem:[#allocation17_spill]] %s2547_s0 }
   0x2   :  { %2562 = sst [smem:[#allocation18_spill]] %s2549_s2 }
   0x3   :  { %9 = vsyncpa [#allocation5], 0 }
   0x4   :  { %10 = vsyncpa [#allocation8], 0 }
   0x5   :  { %11 = vsyncpa [#allocation6], 0  ;;  %s2159_s15 = smov 0   ;;  %s2161_s16 = smov 0  }
   0x6   :  { %s2163_s17 = smov 0   ;;  %s2165_s18 = smov 0  }
   0x7   :  { %s2167_s19 = smov 0   ;;  %s2169_s20 = smov 0  }
   0x8 LB: > { %s2188_s21 = sadd.s32 4294967295, %s2123_s20   ;;  %s83_s22 = sadd.s32 1, %s2111_s17  ;;  %s2123_s20 = sphi %s2169_s20, %s17_s20   ;;  %s2119_s19 = sphi %s2167_s19, %s2588_s19   ;;  %s2115_s18 = sphi %s2165_s18, %s2587_s18   ;;  %s2111_s17 = sphi %s2163_s17, %s2586_s17   ;;  %s2107_s16 = sphi %s2161_s16, %s2585_s16   ;;  %s2103_s15 = sphi %s2159_s15, %s2584_s15  }
   0x9   : > { %p90_p0 = scmp.ne.s32.totalorder %s2111_s17, %s2107_s16  ;;  %p91_p1 = scmp.eq.s32.totalorder %s2123_s20, 0 }
   0xa   : > { %p96_p2 = scmp.ne.s32.totalorder %s2107_s16, %s2103_s15  ;;  %p2552_p3 = scmp.eq.s32.totalorder %s2188_s21, 0 }
   0xb   : > { %p92_p4 = por %p91_p1, %p90_p0  ;;  %p1445_p5 = scmp.ge.s32.totalorder %s2123_s20, 1 }
   0xc   : > { %p2199_p6 = por %p2552_p3, %p96_p2  ;;  %p161_p7 = scmp.lt.s32.totalorder %s2123_s20, 3 }
   0xd   : > { %s2125_s25 = smov [#allocation4]   ;;  %p1819_p10 = scmp.lt.s32.totalorder %s2123_s20, 2 }
   0xe   : > { %s2563_s23 = scalar_select %p2199_p6, 1, 0 }
   0xf   : > { %p2204_p8 = pnand %p1445_p5, %p161_p7  ;;  %s176_s26 = sshll.u32 %s2125_s25, 4  ;;  %s177_s26 = int_to_ptr.vmem [resolvable:$true] %s176_s26 }
  0x10   : > { %p2217_p12 = pnand %p1819_p10, %p92_p4  ;;  %s29_s29 = sadd.s32 1, %s2119_s19 }
  0x11   : > { %s2564_s24 = scalar_select %p2204_p8, 1, 0 }
  0x12   : > { %p1803_p9 = pneg %p2204_p8  ;;  %s2567_s0 = sld [smem:[#allocation17_spill]] }
  0x13   : > { %s2566_s28 = scalar_select %p2217_p12, 1, 0 }
  0x14   : > { %p2213_p11 = pnand %p1803_p9, %p2552_p3 }
  0x16   : > { %p2557_p0 = pneg %p2213_p11 }
  0x18   : > { %s1919_s6 = scalar_lea.hbm %s2567_s0, 1024 }
  0x19   : > { %p1920_p13 = scmp.ne.s32.totalorder %s2567_s0, %s1919_s6  ;;  %p1926_p4 = scmp.lt.u32.totalorder %s1919_s6, %s2567_s0 }
  0x1b   : > { %p1922_p1 = pnand %p2557_p0, %p1920_p13 }
  0x1d   : > { %p1923_p2 = pneg %p1922_p1 }
  0x1f   : > { %p1928_p5 = pnand %p1926_p4, %p1923_p2 }
  0x21   : > { %1931 = shalt.err (!%p1928_p5)
}
  0x22   : > { %s1932_s11 = scalar_lea.vmem %s177_s26, 1024  ;;  %p1940_p3 = scmp.lt.s32.totalorder %s177_s26, %s177_s26 }
  0x23   : > { %p1933_p7 = scmp.ne.s32.totalorder %s177_s26, %s1932_s11  ;;  %p1941_p6 = scmp.lt.s32.totalorder %s1932_s11, %s1932_s11 }
  0x25   : > { %p1935_p9 = pnand %p1933_p7, %p2557_p0  ;;  %p1942_p8 = por %p1941_p6, %p1940_p3 }
  0x27   : > { %p1936_p10 = pneg %p1935_p9 }
  0x29   : > { %p1943_p12 = pnand %p1942_p8, %p1936_p10 }
  0x2b   : > { %1946 = shalt.err (!%p1943_p12)
}
  0x2c   : > { %s2126_s12 = smov 64   ;;  %s2127_s13 = smov 4  }
  0x2d   : > { %1806 = dma.hbm_to_vmem [thread:$0]  (!%p2213_p11), %s2567_s0, 1024, %s177_s26, [#allocation5], %s2126_s12, %s2126_s12, %s2127_s13  }
  0x2e   : > { %p31_p3 = scmp.ge.s32.totalorder %s29_s29, 2  ;;  %s203_s25 = sand.u32 1, %s2123_s20  }
  0x2f   : > { %s205_s30 = sand.u32 1, %s2111_s17   ;;  %s2556_s7 = sshll.u32 %s2119_s19, 10 }
  0x30   : > { %s2590_s29 = smov (%p31_p3, %s29_s29), 0  ;;  %s2251_s5 = sshll.u32 %s205_s30, 6 }
  0x31   : > { %2568 = sst [smem:[#allocation16_spill]] %s2590_s29  ;;  %s80_s6 = ssub.s32 %s2119_s19, %s2590_s29 }
  0x32   : > { %p81_p6 = scmp.eq.s32.totalorder %s80_s6, 0  ;;  %s2569_s2 = sld [smem:[#allocation18_spill]] }
  0x33   : > { %s207_s26 = scalar_lea.vmem [#allocation9], %s2251_s5  ;;  %s2271_s15 = scalar_lea.sflag [#allocation5], %s203_s25 }
  0x34   : > { %s214_s11 = sshll.u32 %s207_s26, 4  ;;  %p2570_p12 = scmp.ne.s32.totalorder %s2566_s28, 0  ;;  %s2269_s11 = int_to_ptr.vmem [resolvable:$true] %s214_s11 }
  0x35   : > { %s2267_s14 = scalar_select %p81_p6, %s2111_s17, %s83_s22  }
  0x36   : > { %p2559_p13 = pneg %p2570_p12 }
  0x38   : > { %s2261_s10 = scalar_lea.hbm %s2569_s2, %s2556_s7  ;;  %s1952_s9 = scalar_lea.hbm %s2569_s2, 2048 }
  0x39   : > { %s1947_s30 = scalar_lea.hbm %s2261_s10, 1024  ;;  %p1953_p4 = scmp.lt.u32.totalorder %s2261_s10, %s2569_s2 }
  0x3a   : > { %p1948_p8 = scmp.ne.s32.totalorder %s2261_s10, %s1947_s30  ;;  %p1954_p5 = scmp.lt.u32.totalorder %s1952_s9, %s1947_s30 }
  0x3b   : > { %p1956_p9 = scmp.lt.u32.totalorder %s1947_s30, %s2261_s10 }
  0x3c   : > { %p1950_p1 = pnand %p2559_p13, %p1948_p8  ;;  %p1955_p7 = por %p1954_p5, %p1953_p4 }
  0x3e   : > { %p1951_p2 = pneg %p1950_p1  ;;  %p1957_p10 = por %p1956_p9, %p1955_p7 }
  0x40   : > { %p1958_p3 = pnand %p1957_p10, %p1951_p2 }
  0x42   : > { %1961 = shalt.err (!%p1958_p3)
}
  0x43   : > { %s1962_s22 = scalar_lea.vmem %s2269_s11, 1024  ;;  %s2128_s25 = smov [#allocation9]  }
  0x44   : > { %p1963_p6 = scmp.ne.s32.totalorder %s2269_s11, %s1962_s22  ;;  %s1967_s6 = sshll.u32 %s2128_s25, 4  ;;  %s1968_s6 = int_to_ptr.vmem [resolvable:$false] %s1967_s6 }
  0x45   : > { %s1969_s7 = scalar_lea.vmem %s1968_s6, 2048  ;;  %p1970_p0 = scmp.lt.s32.totalorder %s2269_s11, %s1968_s6 }
  0x46   : > { %p1965_p8 = pnand %p1963_p6, %p2559_p13  ;;  %p1971_p4 = scmp.lt.s32.totalorder %s1969_s7, %s1962_s22 }
  0x48   : > { %p1966_p1 = pneg %p1965_p8  ;;  %p1972_p5 = por %p1971_p4, %p1970_p0 }
  0x4a   : > { %p1973_p7 = pnand %p1972_p5, %p1966_p1 }
  0x4c   : > { %1976 = shalt.err (!%p1973_p7)
}
  0x4d   : > { %1813 = dma.hbm_to_vmem [thread:$0]  (!%p2570_p12), %s2261_s10, 1024, %s2269_s11, %s2271_s15, %s2126_s12, %s2126_s12, %s2127_s13  }
  0x4e   : > { %s2129_s30 = smov [#allocation7]   ;;  %s2571_s9 = sshll.u32 %s2119_s19, 10 }
  0x4f   : > { %s189_s8 = sshll.u32 %s2129_s30, 4  ;;  %s2307_s25 = scalar_lea.hbm %s2550_s3, %s2571_s9  ;;  %s190_s8 = int_to_ptr.vmem [resolvable:$true] %s189_s8 }
  0x50   : > { %s1977_s0 = scalar_lea.hbm %s2548_s1, 1024  ;;  %p2572_p2 = pneg %p2213_p11 }
  0x51   : > { %p1978_p0 = scmp.ne.s32.totalorder %s2548_s1, %s1977_s0  ;;  %p1984_p3 = scmp.lt.u32.totalorder %s1977_s0, %s2548_s1 }
  0x53   : > { %p1980_p9 = pnand %p1978_p0, %p2572_p2 }
  0x55   : > { %p1981_p10 = pneg %p1980_p9 }
  0x57   : > { %p1986_p6 = pnand %p1984_p3, %p1981_p10 }
  0x59   : > { %1989 = shalt.err (!%p1986_p6)
}
  0x5a   : > { %s1990_s30 = scalar_lea.vmem %s190_s8, 1024  ;;  %p2573_p1 = pmov %p2572_p2 }
  0x5b   : > { %p1991_p8 = scmp.ne.s32.totalorder %s190_s8, %s1990_s30  ;;  %p1998_p7 = scmp.lt.s32.totalorder %s190_s8, %s190_s8 }
  0x5c   : > { %p1999_p13 = scmp.lt.s32.totalorder %s1990_s30, %s1990_s30 }
  0x5d   : > { %p1993_p4 = pnand %p1991_p8, %p2573_p1 }
  0x5e   : > { %p2000_p12 = por %p1999_p13, %p1998_p7 }
  0x5f   : > { %p1994_p5 = pneg %p1993_p4 }
  0x61   : > { %p2001_p0 = pnand %p2000_p12, %p1994_p5 }
  0x63   : > { %2004 = shalt.err (!%p2001_p0)
}
  0x64   : > { %1809 = dma.hbm_to_vmem [thread:$0]  (!%p2213_p11), %s2548_s1, 1024, %s190_s8, [#allocation8], %s2126_s12, %s2126_s12, %s2127_s13  }
  0x65   : > { %s228_s29 = scalar_lea.vmem [#allocation10], %s2251_s5  ;;  %s2005_s26 = scalar_lea.hbm %s2307_s25, 1024 }
  0x66   : > { %s237_s9 = sshll.u32 %s228_s29, 4  ;;  %p2006_p12 = scmp.ne.s32.totalorder %s2307_s25, %s2005_s26  ;;  %s2333_s9 = int_to_ptr.vmem [resolvable:$true] %s237_s9 }
  0x67   : > { %p2574_p13 = scmp.ne.s32.totalorder %s2566_s28, 0  ;;  %s2010_s6 = scalar_lea.hbm %s2550_s3, 2048 }
  0x68   : > { %p2011_p3 = scmp.lt.u32.totalorder %s2307_s25, %s2550_s3  ;;  %p2012_p6 = scmp.lt.u32.totalorder %s2010_s6, %s2005_s26 }
  0x69   : > { %p2575_p2 = pneg %p2574_p13  ;;  %p2014_p8 = scmp.lt.u32.totalorder %s2005_s26, %s2307_s25 }
  0x6a   : > { %p2013_p11 = por %p2012_p6, %p2011_p3 }
  0x6b   : > { %p2008_p9 = pnand %p2006_p12, %p2575_p2 }
  0x6c   : > { %p2015_p1 = por %p2014_p8, %p2013_p11 }
  0x6d   : > { %p2009_p10 = pneg %p2008_p9 }
  0x6f   : > { %p2016_p4 = pnand %p2015_p1, %p2009_p10 }
  0x71   : > { %2019 = shalt.err (!%p2016_p4)
}
  0x72   : > { %s2020_s5 = scalar_lea.vmem %s2333_s9, 1024  ;;  %p2576_p7 = pmov %p2575_p2 }
  0x73   : > { %p2021_p5 = scmp.ne.s32.totalorder %s2333_s9, %s2020_s5  ;;  %s2130_s8 = smov [#allocation10]  }
  0x74   : > { %s2025_s11 = sshll.u32 %s2130_s8, 4  ;;  %s2026_s11 = int_to_ptr.vmem [resolvable:$false] %s2025_s11 }
  0x75   : > { %p2023_p0 = pnand %p2021_p5, %p2576_p7  ;;  %s2027_s30 = scalar_lea.vmem %s2026_s11, 2048 }
  0x76   : > { %p2028_p2 = scmp.lt.s32.totalorder %s2333_s9, %s2026_s11  ;;  %p2029_p9 = scmp.lt.s32.totalorder %s2027_s30, %s2020_s5 }
  0x77   : > { %p2024_p12 = pneg %p2023_p0 }
  0x78   : > { %p2030_p3 = por %p2029_p9, %p2028_p2 }
  0x7a   : > { %p2031_p6 = pnand %p2030_p3, %p2024_p12 }
  0x7c   : > { %2034 = shalt.err (!%p2031_p6)
}
  0x7d   : > { %1816 = dma.hbm_to_vmem [thread:$0]  (!%p2574_p13), %s2307_s25, 1024, %s2333_s9, %s2271_s15, %s2126_s12, %s2126_s12, %s2127_s13  }
  0x7e   : > { %p2577_p10 = scmp.ne.s32.totalorder %s2564_s24, 0 }
  0x7f   : > { %p2578_p11 = scmp.eq.s32.totalorder (!%p2577_p10), %s2188_s21, 0 }
  0x80   : > { %249 = sbr.rel (%p2577_p10) target bundleno = 1218 (0x4c2), region = 36 }
  0x87   : > { %2086 = dma.done.wait (%p2578_p11), [#allocation5], 1024   ;;  %p2579_p8 = pmov %p2578_p11 }
  0x89   : > { %2088 = vsyncadd (%p2579_p8), [#allocation5], 4294966272  ;;  %p2580_p1 = pmov %p2579_p8 }
  0x8b   : > { %2090 = dma.done.wait (%p2580_p1), [#allocation8], 1024   ;;  %p2581_p4 = pmov %p2580_p1 }
  0x8c   : > { %s259_s28 = sand.u32 1, %s2188_s21   ;;  %s261_s12 = sand.u32 1, %s2107_s16  }
  0x8d   : > { %2092 = vsyncadd (%p2581_p4), [#allocation8], 4294966272  ;;  %s1458_s13 = sshll.u32 %s261_s12, 6  ;;  %s260_s24 = scalar_lea.sflag [#allocation5], %s259_s28 }
  0x8e   : > { %s2374_s15 = scalar_lea.vmem [#allocation9], %s1458_s13  ;;  %p2582_p13 = scmp.ne.s32.totalorder %s2563_s23, 0 }
  0x90   : > { %2094 = dma.done.wait (%p2582_p13), %s260_s24, 2048  }
  0x91   : > { %2096 = vsyncadd (%p2582_p13), %s260_s24, 4294965248  ;;  %p301_p5 = scmp.eq.s32.totalorder %s2115_s18, 0  ;;  %s2381_s25 = scalar_lea.vmem [#allocation10], %s1458_s13 }
  0x92   : > { %v1879_v0 = vld [vmem:[#allocation7] sm:$0xff] (%p301_p5)   ;;  %v1880_v1 = vld [vmem:[#allocation7 + $0x8] sm:$0xff] (%p301_p5)   ;;  %v1881_v2 = vld [vmem:[#allocation7 + $0x10] sm:$0xff] (%p301_p5)  }
  0x93   : > { %306 = sbr.rel (!%p301_p5) target bundleno = 154 (0x9a), region = 56  ;;  %371 = vst [vmem:[#allocation2] sm:$0xff] (%p301_p5), %v1879_v0  ;;  %372 = vst [vmem:[#allocation2 + $0x8] sm:$0xff] (%p301_p5), %v1880_v1  ;;  %v1882_v3 = vld [vmem:[#allocation7 + $0x18] sm:$0xff] (%p301_p5)   ;;  %v1883_v4 = vld [vmem:[#allocation7 + $0x20] sm:$0xff] (%p301_p5)  }
  0x94   : > { %373 = vst [vmem:[#allocation2 + $0x10] sm:$0xff] (%p301_p5), %v1881_v2  ;;  %374 = vst [vmem:[#allocation2 + $0x18] sm:$0xff] (%p301_p5), %v1882_v3  ;;  %v1884_v5 = vld [vmem:[#allocation7 + $0x28] sm:$0xff] (%p301_p5)   ;;  %v1885_v6 = vld [vmem:[#allocation7 + $0x30] sm:$0xff] (%p301_p5)  }
  0x95   : > { %375 = vst [vmem:[#allocation2 + $0x20] sm:$0xff] (%p301_p5), %v1883_v4  ;;  %376 = vst [vmem:[#allocation2 + $0x28] sm:$0xff] (%p301_p5), %v1884_v5  ;;  %v1886_v7 = vld [vmem:[#allocation7 + $0x38] sm:$0xff] (%p301_p5)  }
  0x96   : > { %377 = vst [vmem:[#allocation2 + $0x30] sm:$0xff] (%p301_p5), %v1885_v6  ;;  %378 = vst [vmem:[#allocation2 + $0x38] sm:$0xff] (%p301_p5), %v1886_v7 }
  0x9a PF: > { %p381_p7 = scmp.lt.s32.totalorder %s2115_s18, 0  ;;  %s382_s23 = ssub.s32 0, %s2115_s18 }
  0x9b   : > { %s1469_s0 = smin.u32 %s2115_s18, %s382_s23 }
  0x9c   : > { %s384_s2 = sand.u32 1, %s1469_s0  }
  0x9d   : > { %s385_s29 = ssub.s32 0, %s384_s2 }
  0x9e   : > { %s2592_s29 = smov (!%p381_p7, %s385_s29), %s384_s2 }
  0x9f   : > { %p1471_p0 = scmp.lt.s32.totalorder %s2592_s29, 0  ;;  %s391_s9 = sadd.s32 2, %s2592_s29 }
  0xa1   : > { %s2594_s9 = smov (!%p1471_p0, %s391_s9), %s2592_s29 }
  0xa2   : > { %p1472_p12 = scmp.ne.s32.totalorder %s2594_s9, 0 }
  0xa3   : > { %v413_v8 = vld [vmem:[#allocation2] sm:$0xff] (!%p1472_p12)  ;;  %v414_v9 = vld [vmem:[#allocation2 + $0x8] sm:$0xff] (!%p1472_p12)  ;;  %v415_v11 = vld [vmem:[#allocation2 + $0x10] sm:$0xff] (!%p1472_p12)  ;;  %p1489_p2 = scmp.ne.s32.totalorder (!%p1472_p12), %s2115_s18, 1 }
  0xa4   : > { %396 = sbr.rel (%p1472_p12) target bundleno = 674 (0x2a2), region = 60  ;;  %1659 = vmatprep.subr.bf16.mxu0 (!%p1472_p12), %v413_v8  ;;  %v1887_v10 = vld [vmem:[#allocation4] sm:$0xff] (!%p1472_p12)   ;;  %v416_v12 = vld [vmem:[#allocation2 + $0x18] sm:$0xff] (!%p1472_p12)  ;;  %v1896_v15 = vld [vmem:[%s2374_s15 + $0x8] sm:$0xff] (!%p1472_p12)  }
  0xa5   : > { %1660 = vmatpush3.bf16.msra.mxu0 (!%p1472_p12), %v413_v8  ;;  %1675 = vmatprep.mubr.bf16.mxu0 (!%p1472_p12), %v1887_v10  ;;  %v417_v13 = vld [vmem:[#allocation2 + $0x20] sm:$0xff] (!%p1472_p12)  ;;  %v1897_v16 = vld [vmem:[%s2374_s15 + $0x10] sm:$0xff] (!%p1472_p12)   ;;  %v418_v17 = vld [vmem:[#allocation2 + $0x28] sm:$0xff] (!%p1472_p12) }
  0xa6   : > { %1661 = vmatprep.subr.bf16.mxu0 (!%p1472_p12), %v414_v9  ;;  %v1895_v14 = vld [vmem:[%s2374_s15] sm:$0xff] (!%p1472_p12)   ;;  %v1898_v18 = vld [vmem:[%s2374_s15 + $0x18] sm:$0xff] (!%p1472_p12)   ;;  %v419_v19 = vld [vmem:[#allocation2 + $0x30] sm:$0xff] (!%p1472_p12) }
  0xa7   : > { %1691 = vmatprep.subr.bf16.mxu1 (!%p1472_p12), %v1895_v14  ;;  %v1899_v20 = vld [vmem:[%s2374_s15 + $0x20] sm:$0xff] (!%p1472_p12)   ;;  %v420_v21 = vld [vmem:[#allocation2 + $0x38] sm:$0xff] (!%p1472_p12)  ;;  %v1900_v22 = vld [vmem:[%s2374_s15 + $0x28] sm:$0xff] (!%p1472_p12)  }
  0xa8   : > { %1692 = vmatpush3.bf16.msra.mxu1 (!%p1472_p12), %v1895_v14  ;;  %v1888_v23 = vld [vmem:[#allocation4 + $0x8] sm:$0xff] (!%p1472_p12)   ;;  %v1889_v24 = vld [vmem:[#allocation4 + $0x10] sm:$0xff] (!%p1472_p12)   ;;  %v1890_v26 = vld [vmem:[#allocation4 + $0x18] sm:$0xff] (!%p1472_p12)  }
  0xa9   : > { %1662 = vmatpush3.bf16.msra.mxu0 (!%p1472_p12), %v414_v9  ;;  %1693 = vmatprep.subr.bf16.mxu1 (!%p1472_p12), %v1896_v15  ;;  %v1901_v25 = vld [vmem:[%s2374_s15 + $0x30] sm:$0xff] (!%p1472_p12)   ;;  %v1891_v27 = vld [vmem:[#allocation4 + $0x20] sm:$0xff] (!%p1472_p12)   ;;  %v1892_v28 = vld [vmem:[#allocation4 + $0x28] sm:$0xff] (!%p1472_p12)  }
  0xaa   : > { %1663 = vmatprep.subr.bf16.mxu0 (!%p1472_p12), %v415_v11  ;;  %v1893_v29 = vld [vmem:[#allocation4 + $0x30] sm:$0xff] (!%p1472_p12)   ;;  %v1894_v30 = vld [vmem:[#allocation4 + $0x38] sm:$0xff] (!%p1472_p12)  }
  0xab   : > { %v1902_v31 = vld [vmem:[%s2374_s15 + $0x38] sm:$0xff]  }
  0xac   : > { %1694 = vmatpush3.bf16.msra.mxu1 %v1896_v15 }
  0xad   : > { %1664 = vmatpush3.bf16.msra.mxu0 %v415_v11  ;;  %1695 = vmatprep.subr.bf16.mxu1 %v1897_v16 }
  0xae   : > { %1665 = vmatprep.subr.bf16.mxu0 %v416_v12 }
  0xb0   : > { %1696 = vmatpush3.bf16.msra.mxu1 %v1897_v16 }
  0xb1   : > { %1666 = vmatpush3.bf16.msra.mxu0 %v416_v12  ;;  %1697 = vmatprep.subr.bf16.mxu1 %v1898_v18 }
  0xb2   : > { %1667 = vmatprep.subr.bf16.mxu0 %v417_v13 }
  0xb4   : > { %1698 = vmatpush3.bf16.msra.mxu1 %v1898_v18 }
  0xb5   : > { %1668 = vmatpush3.bf16.msra.mxu0 %v417_v13  ;;  %1699 = vmatprep.subr.bf16.mxu1 %v1899_v20 }
  0xb6   : > { %1669 = vmatprep.subr.bf16.mxu0 %v418_v17 }
  0xb8   : > { %1700 = vmatpush3.bf16.msra.mxu1 %v1899_v20 }
  0xb9   : > { %1670 = vmatpush3.bf16.msra.mxu0 %v418_v17  ;;  %1701 = vmatprep.subr.bf16.mxu1 %v1900_v22 }
  0xba   : > { %1671 = vmatprep.subr.bf16.mxu0 %v419_v19 }
  0xbc   : > { %1702 = vmatpush3.bf16.msra.mxu1 %v1900_v22 }
  0xbd   : > { %1672 = vmatpush3.bf16.msra.mxu0 %v419_v19  ;;  %1703 = vmatprep.subr.bf16.mxu1 %v1901_v25 }
  0xbe   : > { %1673 = vmatprep.subr.bf16.mxu0 %v420_v21 }
  0xc0   : > { %1704 = vmatpush3.bf16.msra.mxu1 %v1901_v25 }
  0xc1   : > { %1674 = vmatpush3.bf16.msra.mxu0 %v420_v21  ;;  %1705 = vmatprep.subr.bf16.mxu1 %v1902_v31 }
  0xc4   : > { %1676 = vmatmul.mubr.bf16.vlgmr.msra.gmra.mrb[0].mxu0 %v1888_v23  ;;  %1706 = vmatpush3.bf16.msra.mxu1 %v1902_v31 }
  0xc5   : > { %1679 = vmatprep.mubr.bf16.mxu0 %v1889_v24 }
  0xcc   : > { %1680 = vmatmul.mubr.bf16.gmra.mrb[4].mxu0 %v1890_v26 }
  0xcd   : > { %1683 = vmatprep.mubr.bf16.mxu0 %v1891_v27 }
  0xd4   : > { %1684 = vmatmul.mubr.bf16.gmra.mrb[8].mxu0 %v1892_v28 }
  0xd5   : > { %1687 = vmatprep.mubr.bf16.mxu0 %v1893_v29 }
  0xdc   : > { %1688 = vmatmul.mubr.bf16.gmra.mrb[12].mxu0 %v1894_v30 }
 0x197   : > { %v1677_v32 = vpop.f32.mrb[0].mxu0 }
 0x198   : > { %v503_v33 = vpop.f32.mrb[1].mxu0 }
 0x199   : > { %v1678_v34 = vpop.f32.mrb[2].mxu0 }
 0x19a   : > { %v567_v35 = vpack.c.bf16 %v1678_v34, %v1677_v32  ;;  %v506_v36 = vpop.f32.mrb[3].mxu0 }
 0x19b   : > { %v566_v37 = vpack.c.bf16 %v506_v36, %v503_v33 }
 0x19d   : > { %1707 = vmatprep.mubr.bf16.mxu1 %v566_v37 }
 0x19e   : > { %1708 = vmatmul.mubr.bf16.vlgmr.msra.gmra.mrb[0].mxu1 %v567_v35 }
 0x19f   : > { %v1681_v38 = vpop.f32.mrb[4].mxu0 }
 0x1a0   : > { %v519_v39 = vpop.f32.mrb[5].mxu0 }
 0x1a1   : > { %v1682_v40 = vpop.f32.mrb[6].mxu0 }
 0x1a2   : > { %v569_v41 = vpack.c.bf16 %v1682_v40, %v1681_v38  ;;  %v522_v42 = vpop.f32.mrb[7].mxu0 }
 0x1a3   : > { %v568_v43 = vpack.c.bf16 %v522_v42, %v519_v39 }
 0x1a5   : > { %1711 = vmatprep.mubr.bf16.mxu1 %v568_v43 }
 0x1a6   : > { %1712 = vmatmul.mubr.bf16.gmra.mrb[4].mxu1 %v569_v41 }
 0x1a7   : > { %v1685_v44 = vpop.f32.mrb[8].mxu0 }
 0x1a8   : > { %v535_v45 = vpop.f32.mrb[9].mxu0 }
 0x1a9   : > { %v1686_v46 = vpop.f32.mrb[10].mxu0 }
 0x1aa   : > { %v571_v47 = vpack.c.bf16 %v1686_v46, %v1685_v44  ;;  %v538_v48 = vpop.f32.mrb[11].mxu0 }
 0x1ab   : > { %v570_v49 = vpack.c.bf16 %v538_v48, %v535_v45 }
 0x1ad   : > { %1715 = vmatprep.mubr.bf16.mxu1 %v570_v49 }
 0x1ae   : > { %1716 = vmatmul.mubr.bf16.gmra.mrb[8].mxu1 %v571_v47 }
 0x1af   : > { %v1689_v50 = vpop.f32.mrb[12].mxu0 }
 0x1b0   : > { %v551_v51 = vpop.f32.mrb[13].mxu0 }
 0x1b1   : > { %v1690_v52 = vpop.f32.mrb[14].mxu0 }
 0x1b2   : > { %v573_v53 = vpack.c.bf16 %v1690_v52, %v1689_v50  ;;  %v554_v54 = vpop.f32.mrb[15].mxu0 }
 0x1b3   : > { %v572_v55 = vpack.c.bf16 %v554_v54, %v551_v51 }
 0x1b5   : > { %1719 = vmatprep.mubr.bf16.mxu1 %v572_v55 }
 0x1b6   : > { %1720 = vmatmul.mubr.bf16.gmra.mrb[12].mxu1 %v573_v53 }
 0x271   : > { %v1709_v56 = vpop.f32.mrb[0].mxu1 }
 0x272   : > { %v672_v57 = vpop.f32.mrb[1].mxu1  ;;  %740 = vst [vmem:[#allocation11 + $0x10] sm:$0xff] (!%p1489_p2), %v1709_v56 }
 0x273   : > { %v1710_v58 = vpop.f32.mrb[2].mxu1  ;;  %738 = vst [vmem:[#allocation11] sm:$0xff] (!%p1489_p2), %v672_v57 }
 0x274   : > { %v675_v59 = vpop.f32.mrb[3].mxu1  ;;  %741 = vst [vmem:[#allocation11 + $0x18] sm:$0xff] (!%p1489_p2), %v1710_v58 }
 0x275   : > { %739 = vst [vmem:[#allocation11 + $0x8] sm:$0xff] (!%p1489_p2), %v675_v59 }
 0x279   : > { %v2397_v60 = vpop.f32.mrb[4].mxu1 }
 0x27a   : > { %v688_v61 = vpop.f32.mrb[5].mxu1  ;;  %744 = vst [vmem:[#allocation11 + $0x30] sm:$0xff] (!%p1489_p2), %v2397_v60 }
 0x27b   : > { %v2399_v62 = vpop.f32.mrb[6].mxu1  ;;  %742 = vst [vmem:[#allocation11 + $0x20] sm:$0xff] (!%p1489_p2), %v688_v61 }
 0x27c   : > { %v691_v63 = vpop.f32.mrb[7].mxu1  ;;  %745 = vst [vmem:[#allocation11 + $0x38] sm:$0xff] (!%p1489_p2), %v2399_v62 }
 0x27d   : > { %743 = vst [vmem:[#allocation11 + $0x28] sm:$0xff] (!%p1489_p2), %v691_v63 }
 0x281   : > { %v2401_v0 = vpop.f32.mrb[8].mxu1 }
 0x282   : > { %v2403_v1 = vpop.f32.mrb[9].mxu1  ;;  %748 = vst [vmem:[#allocation11 + $0x50] sm:$0xff] (!%p1489_p2), %v2401_v0 }
 0x283   : > { %v2405_v2 = vpop.f32.mrb[10].mxu1  ;;  %746 = vst [vmem:[#allocation11 + $0x40] sm:$0xff] (!%p1489_p2), %v2403_v1 }
 0x284   : > { %v2407_v3 = vpop.f32.mrb[11].mxu1  ;;  %749 = vst [vmem:[#allocation11 + $0x58] sm:$0xff] (!%p1489_p2), %v2405_v2 }
 0x285   : > { %747 = vst [vmem:[#allocation11 + $0x48] sm:$0xff] (!%p1489_p2), %v2407_v3 }
 0x286   : > { %737 = sbr.rel (%p1489_p2) target bundleno = 654 (0x28e), region = 64 }
 0x289   : > { %v2409_v4 = vpop.f32.mrb[12].mxu1 }
 0x28a   : > { %v2411_v5 = vpop.f32.mrb[13].mxu1  ;;  %752 = vst [vmem:[#allocation11 + $0x70] sm:$0xff] (!%p1489_p2), %v2409_v4 }
 0x28b   : > { %v2413_v6 = vpop.f32.mrb[14].mxu1  ;;  %750 = vst [vmem:[#allocation11 + $0x60] sm:$0xff] (!%p1489_p2), %v2411_v5 }
 0x28c   : > { %v2415_v7 = vpop.f32.mrb[15].mxu1  ;;  %753 = vst [vmem:[#allocation11 + $0x78] sm:$0xff] (!%p1489_p2), %v2413_v6 }
 0x28d   : > { %751 = vst [vmem:[#allocation11 + $0x68] sm:$0xff] %v2415_v7 }
 0x28e PF: > { %p1490_p9 = scmp.eq.s32.totalorder %s2115_s18, 1 }
 0x28f   : > { %v758_v8 = vmax.f32 (!%p1490_p9), %v672_v57, 0.0  ;;  %v759_v9 = vmax.f32 (!%p1490_p9), %v675_v59, 0.0  ;;  %v1518_v10 = vld [vmem:[%s2381_s25] sm:$0xff] (!%p1490_p9)   ;;  %v760_v11 = vmax.f32 (!%p1490_p9), %v1709_v56, 0.0  ;;  %v761_v12 = vmax.f32 (!%p1490_p9), %v1710_v58, 0.0  ;;  %v1581_v13 = vld [vmem:[%s2381_s25 + $0x8] sm:$0xff] (!%p1490_p9)  }
 0x290   : > { %757 = sbr.rel (%p1490_p9) target bundleno = 674 (0x2a2), region = 68  ;;  %v1519_v14 = vunpack.c.l.bf16 (!%p1490_p9), %v1518_v10  ;;  %v1520_v15 = vunpack.c.h.bf16 (!%p1490_p9), %v1518_v10  ;;  %v1523_v16 = vunpack.c.l.bf16 (!%p1490_p9), %v1581_v13  ;;  %v1524_v17 = vunpack.c.h.bf16 (!%p1490_p9), %v1581_v13  ;;  %v1582_v18 = vld [vmem:[%s2381_s25 + $0x10] sm:$0xff] (!%p1490_p9)   ;;  %v1583_v23 = vld [vmem:[%s2381_s25 + $0x18] sm:$0xff] (!%p1490_p9)   ;;  %v1584_v28 = vld [vmem:[%s2381_s25 + $0x20] sm:$0xff] (!%p1490_p9)  }
 0x291   : > { %v762_v19 = vmax.f32 (!%p1490_p9), %v688_v61, 0.0  ;;  %v763_v20 = vmax.f32 (!%p1490_p9), %v691_v63, 0.0  ;;  %v1527_v21 = vunpack.c.l.bf16 (!%p1490_p9), %v1582_v18  ;;  %v1528_v22 = vunpack.c.h.bf16 (!%p1490_p9), %v1582_v18  ;;  %v1585_v37 = vld [vmem:[%s2381_s25 + $0x28] sm:$0xff] (!%p1490_p9)   ;;  %v1586_v46 = vld [vmem:[%s2381_s25 + $0x30] sm:$0xff] (!%p1490_p9)   ;;  %v1587_v51 = vld [vmem:[%s2381_s25 + $0x38] sm:$0xff] (!%p1490_p9)  }
 0x292   : > { %v806_v24 = vmul.f32 (!%p1490_p9), %v1519_v14, %v758_v8  ;;  %v807_v25 = vmul.f32 (!%p1490_p9), %v1520_v15, %v759_v9  ;;  %v808_v26 = vmul.f32 (!%p1490_p9), %v1523_v16, %v760_v11  ;;  %v809_v27 = vmul.f32 (!%p1490_p9), %v1524_v17, %v761_v12 }
 0x293   : > { %v810_v29 = vmul.f32 (!%p1490_p9), %v1527_v21, %v762_v19  ;;  %v811_v30 = vmul.f32 (!%p1490_p9), %v1528_v22, %v763_v20  ;;  %v764_v31 = vmax.f32 (!%p1490_p9), %v2397_v60, 0.0  ;;  %v765_v32 = vmax.f32 (!%p1490_p9), %v2399_v62, 0.0 }
 0x294   : > { %v822_v33 = vpack.c.bf16 (!%p1490_p9), %v807_v25, %v806_v24  ;;  %842 = vst [vmem:[#allocation11] sm:$0xff] (!%p1490_p9), %v806_v24  ;;  %843 = vst [vmem:[#allocation11 + $0x8] sm:$0xff] (!%p1490_p9), %v807_v25  ;;  %v823_v34 = vpack.c.bf16 (!%p1490_p9), %v809_v27, %v808_v26  ;;  %v1531_v35 = vunpack.c.l.bf16 (!%p1490_p9), %v1583_v23  ;;  %v1532_v36 = vunpack.c.h.bf16 (!%p1490_p9), %v1583_v23 }
 0x295   : > { %844 = vst [vmem:[#allocation11 + $0x10] sm:$0xff] (!%p1490_p9), %v808_v26  ;;  %845 = vst [vmem:[#allocation11 + $0x18] sm:$0xff] (!%p1490_p9), %v809_v27  ;;  %v824_v38 = vpack.c.bf16 (!%p1490_p9), %v811_v30, %v810_v29  ;;  %v766_v39 = vmax.f32 (!%p1490_p9), %v2403_v1, 0.0  ;;  %v767_v40 = vmax.f32 (!%p1490_p9), %v2407_v3, 0.0  ;;  %v1535_v41 = vunpack.c.l.bf16 (!%p1490_p9), %v1584_v28 }
 0x296   : > { %846 = vst [vmem:[#allocation11 + $0x20] sm:$0xff] (!%p1490_p9), %v810_v29  ;;  %847 = vst [vmem:[#allocation11 + $0x28] sm:$0xff] (!%p1490_p9), %v811_v30  ;;  %v812_v42 = vmul.f32 (!%p1490_p9), %v1531_v35, %v764_v31  ;;  %v813_v43 = vmul.f32 (!%p1490_p9), %v1532_v36, %v765_v32  ;;  %v1536_v44 = vunpack.c.h.bf16 (!%p1490_p9), %v1584_v28  ;;  %v768_v45 = vmax.f32 (!%p1490_p9), %v2401_v0, 0.0 }
 0x297   : > { %834 = vst [vmem:[#allocation3] sm:$0xff] %v822_v33  ;;  %835 = vst [vmem:[#allocation3 + $0x8] sm:$0xff] %v823_v34  ;;  %v814_v47 = vmul.f32 %v1535_v41, %v766_v39  ;;  %v769_v48 = vmax.f32 %v2405_v2, 0.0  ;;  %v1539_v49 = vunpack.c.l.bf16 %v1585_v37  ;;  %v1540_v50 = vunpack.c.h.bf16 %v1585_v37 }
 0x298   : > { %836 = vst [vmem:[#allocation3 + $0x10] sm:$0xff] %v824_v38  ;;  %v825_v52 = vpack.c.bf16 %v813_v43, %v812_v42  ;;  %848 = vst [vmem:[#allocation11 + $0x30] sm:$0xff] %v812_v42  ;;  %v815_v53 = vmul.f32 %v1536_v44, %v767_v40  ;;  %v770_v54 = vmax.f32 %v2411_v5, 0.0  ;;  %v771_v55 = vmax.f32 %v2415_v7, 0.0 }
 0x299   : > { %849 = vst [vmem:[#allocation11 + $0x38] sm:$0xff] %v813_v43  ;;  %850 = vst [vmem:[#allocation11 + $0x40] sm:$0xff] %v814_v47  ;;  %v816_v56 = vmul.f32 %v1539_v49, %v768_v45  ;;  %v817_v57 = vmul.f32 %v1540_v50, %v769_v48  ;;  %v1543_v58 = vunpack.c.l.bf16 %v1586_v46  ;;  %v1544_v59 = vunpack.c.h.bf16 %v1586_v46 }
 0x29a   : > { %837 = vst [vmem:[#allocation3 + $0x18] sm:$0xff] %v825_v52  ;;  %v826_v60 = vpack.c.bf16 %v815_v53, %v814_v47  ;;  %851 = vst [vmem:[#allocation11 + $0x48] sm:$0xff] %v815_v53  ;;  %v772_v61 = vmax.f32 %v2409_v4, 0.0  ;;  %v773_v62 = vmax.f32 %v2413_v6, 0.0  ;;  %v1547_v63 = vunpack.c.l.bf16 %v1587_v51 }
 0x29b   : > { %v827_v0 = vpack.c.bf16 %v817_v57, %v816_v56  ;;  %852 = vst [vmem:[#allocation11 + $0x50] sm:$0xff] %v816_v56  ;;  %853 = vst [vmem:[#allocation11 + $0x58] sm:$0xff] %v817_v57  ;;  %v818_v1 = vmul.f32 %v1543_v58, %v770_v54  ;;  %v819_v2 = vmul.f32 %v1544_v59, %v771_v55  ;;  %v1548_v3 = vunpack.c.h.bf16 %v1587_v51 }
 0x29c   : > { %838 = vst [vmem:[#allocation3 + $0x20] sm:$0xff] %v826_v60  ;;  %v820_v5 = vmul.f32 %v1547_v63, %v772_v61 }
 0x29d   : > { %839 = vst [vmem:[#allocation3 + $0x28] sm:$0xff] %v827_v0  ;;  %v828_v7 = vpack.c.bf16 %v819_v2, %v818_v1  ;;  %854 = vst [vmem:[#allocation11 + $0x60] sm:$0xff] %v818_v1  ;;  %v821_v8 = vmul.f32 %v1548_v3, %v773_v62 }
 0x29e   : > { %855 = vst [vmem:[#allocation11 + $0x68] sm:$0xff] %v819_v2  ;;  %856 = vst [vmem:[#allocation11 + $0x70] sm:$0xff] %v820_v5 }
 0x29f   : > { %840 = vst [vmem:[#allocation3 + $0x30] sm:$0xff] %v828_v7  ;;  %v829_v9 = vpack.c.bf16 %v821_v8, %v820_v5  ;;  %857 = vst [vmem:[#allocation11 + $0x78] sm:$0xff] %v821_v8 }
 0x2a1   : > { %841 = vst [vmem:[#allocation3 + $0x38] sm:$0xff] %v829_v9 }
 0x2a2 PF: > { %p1491_p3 = scmp.ne.s32.totalorder %s2594_s9, 1 }
 0x2a3   : > { %v1903_v10 = vld [vmem:[#allocation4] sm:$0xff] (!%p1491_p3)   ;;  %v880_v11 = vld [vmem:[#allocation3 + $0x10] sm:$0xff] (!%p1491_p3)  ;;  %v881_v12 = vld [vmem:[#allocation3 + $0x18] sm:$0xff] (!%p1491_p3)  ;;  %p1508_p6 = scmp.ne.s32.totalorder (!%p1491_p3), %s2115_s18, 1 }
 0x2a4   : > { %861 = sbr.rel (%p1491_p3) target bundleno = 1192 (0x4a8), region = 72  ;;  %1739 = vmatprep.mubr.bf16.mxu0 (!%p1491_p3), %v1903_v10  ;;  %v882_v13 = vld [vmem:[#allocation3 + $0x20] sm:$0xff] (!%p1491_p3)  ;;  %v1912_v15 = vld [vmem:[%s2374_s15 + $0x8] sm:$0xff] (!%p1491_p3)   ;;  %v1913_v16 = vld [vmem:[%s2374_s15 + $0x10] sm:$0xff] (!%p1491_p3)  }
 0x2a5   : > { %v1911_v14 = vld [vmem:[%s2374_s15] sm:$0xff] (!%p1491_p3)   ;;  %v883_v17 = vld [vmem:[#allocation3 + $0x28] sm:$0xff] (!%p1491_p3)  ;;  %v1914_v18 = vld [vmem:[%s2374_s15 + $0x18] sm:$0xff] (!%p1491_p3)  }
 0x2a6   : > { %1755 = vmatprep.subr.bf16.mxu1 (!%p1491_p3), %v1911_v14  ;;  %v884_v19 = vld [vmem:[#allocation3 + $0x30] sm:$0xff] (!%p1491_p3)  ;;  %v1915_v20 = vld [vmem:[%s2374_s15 + $0x20] sm:$0xff] (!%p1491_p3)   ;;  %v1916_v22 = vld [vmem:[%s2374_s15 + $0x28] sm:$0xff] (!%p1491_p3)  }
 0x2a7   : > { %1756 = vmatpush3.bf16.msra.mxu1 (!%p1491_p3), %v1911_v14  ;;  %v1904_v23 = vld [vmem:[#allocation4 + $0x8] sm:$0xff] (!%p1491_p3)   ;;  %v1905_v24 = vld [vmem:[#allocation4 + $0x10] sm:$0xff] (!%p1491_p3)   ;;  %v1906_v26 = vld [vmem:[#allocation4 + $0x18] sm:$0xff] (!%p1491_p3)  }
 0x2a8   : > { %1757 = vmatprep.subr.bf16.mxu1 (!%p1491_p3), %v1912_v15  ;;  %v885_v21 = vld [vmem:[#allocation3 + $0x38] sm:$0xff] (!%p1491_p3)  ;;  %v1917_v25 = vld [vmem:[%s2374_s15 + $0x30] sm:$0xff] (!%p1491_p3)   ;;  %v1907_v27 = vld [vmem:[#allocation4 + $0x20] sm:$0xff] (!%p1491_p3)  }
 0x2a9   : > { %v878_v4 = vld [vmem:[#allocation3] sm:$0xff] (!%p1491_p3)  ;;  %v879_v6 = vld [vmem:[#allocation3 + $0x8] sm:$0xff] (!%p1491_p3)  ;;  %v1909_v29 = vld [vmem:[#allocation4 + $0x30] sm:$0xff] (!%p1491_p3)  }
 0x2aa   : > { %1723 = vmatprep.subr.bf16.mxu0 (!%p1491_p3), %v878_v4  ;;  %v1908_v28 = vld [vmem:[#allocation4 + $0x28] sm:$0xff] (!%p1491_p3)   ;;  %v1910_v30 = vld [vmem:[#allocation4 + $0x38] sm:$0xff] (!%p1491_p3)  }
 0x2ab   : > { %1724 = vmatpush3.bf16.msra.mxu0 %v878_v4  ;;  %1758 = vmatpush3.bf16.msra.mxu1 %v1912_v15  ;;  %v1918_v31 = vld [vmem:[%s2374_s15 + $0x38] sm:$0xff]  }
 0x2ac   : > { %1725 = vmatprep.subr.bf16.mxu0 %v879_v6  ;;  %1759 = vmatprep.subr.bf16.mxu1 %v1913_v16 }
 0x2af   : > { %1726 = vmatpush3.bf16.msra.mxu0 %v879_v6  ;;  %1760 = vmatpush3.bf16.msra.mxu1 %v1913_v16 }
 0x2b0   : > { %1727 = vmatprep.subr.bf16.mxu0 %v880_v11  ;;  %1761 = vmatprep.subr.bf16.mxu1 %v1914_v18 }
 0x2b3   : > { %1728 = vmatpush3.bf16.msra.mxu0 %v880_v11  ;;  %1762 = vmatpush3.bf16.msra.mxu1 %v1914_v18 }
 0x2b4   : > { %1729 = vmatprep.subr.bf16.mxu0 %v881_v12  ;;  %1763 = vmatprep.subr.bf16.mxu1 %v1915_v20 }
 0x2b7   : > { %1730 = vmatpush3.bf16.msra.mxu0 %v881_v12  ;;  %1764 = vmatpush3.bf16.msra.mxu1 %v1915_v20 }
 0x2b8   : > { %1731 = vmatprep.subr.bf16.mxu0 %v882_v13  ;;  %1765 = vmatprep.subr.bf16.mxu1 %v1916_v22 }
 0x2bb   : > { %1732 = vmatpush3.bf16.msra.mxu0 %v882_v13  ;;  %1766 = vmatpush3.bf16.msra.mxu1 %v1916_v22 }
 0x2bc   : > { %1733 = vmatprep.subr.bf16.mxu0 %v883_v17  ;;  %1767 = vmatprep.subr.bf16.mxu1 %v1917_v25 }
 0x2bf   : > { %1734 = vmatpush3.bf16.msra.mxu0 %v883_v17  ;;  %1768 = vmatpush3.bf16.msra.mxu1 %v1917_v25 }
 0x2c0   : > { %1735 = vmatprep.subr.bf16.mxu0 %v884_v19  ;;  %1769 = vmatprep.subr.bf16.mxu1 %v1918_v31 }
 0x2c3   : > { %1736 = vmatpush3.bf16.msra.mxu0 %v884_v19  ;;  %1770 = vmatpush3.bf16.msra.mxu1 %v1918_v31 }
 0x2c4   : > { %1737 = vmatprep.subr.bf16.mxu0 %v885_v21 }
 0x2c7   : > { %1738 = vmatpush3.bf16.msra.mxu0 %v885_v21 }
 0x2ca   : > { %1740 = vmatmul.mubr.bf16.vlgmr.msra.gmra.mrb[0].mxu0 %v1904_v23 }
 0x2cb   : > { %1743 = vmatprep.mubr.bf16.mxu0 %v1905_v24 }
 0x2d2   : > { %1744 = vmatmul.mubr.bf16.gmra.mrb[4].mxu0 %v1906_v26 }
 0x2d3   : > { %1747 = vmatprep.mubr.bf16.mxu0 %v1907_v27 }
 0x2da   : > { %1748 = vmatmul.mubr.bf16.gmra.mrb[8].mxu0 %v1908_v28 }
 0x2db   : > { %1751 = vmatprep.mubr.bf16.mxu0 %v1909_v29 }
 0x2e2   : > { %1752 = vmatmul.mubr.bf16.gmra.mrb[12].mxu0 %v1910_v30 }
 0x39d   : > { %v1741_v32 = vpop.f32.mrb[0].mxu0 }
 0x39e   : > { %v968_v33 = vpop.f32.mrb[1].mxu0 }
 0x39f   : > { %v1742_v34 = vpop.f32.mrb[2].mxu0 }
 0x3a0   : > { %v1032_v35 = vpack.c.bf16 %v1742_v34, %v1741_v32  ;;  %v971_v36 = vpop.f32.mrb[3].mxu0 }
 0x3a1   : > { %v1031_v37 = vpack.c.bf16 %v971_v36, %v968_v33 }
 0x3a3   : > { %1771 = vmatprep.mubr.bf16.mxu1 %v1031_v37 }
 0x3a4   : > { %1772 = vmatmul.mubr.bf16.vlgmr.msra.gmra.mrb[0].mxu1 %v1032_v35 }
 0x3a5   : > { %v1745_v38 = vpop.f32.mrb[4].mxu0 }
 0x3a6   : > { %v984_v39 = vpop.f32.mrb[5].mxu0 }
 0x3a7   : > { %v1746_v40 = vpop.f32.mrb[6].mxu0 }
 0x3a8   : > { %v1034_v41 = vpack.c.bf16 %v1746_v40, %v1745_v38  ;;  %v987_v42 = vpop.f32.mrb[7].mxu0 }
 0x3a9   : > { %v1033_v43 = vpack.c.bf16 %v987_v42, %v984_v39 }
 0x3ab   : > { %1775 = vmatprep.mubr.bf16.mxu1 %v1033_v43 }
 0x3ac   : > { %1776 = vmatmul.mubr.bf16.gmra.mrb[4].mxu1 %v1034_v41 }
 0x3ad   : > { %v1749_v44 = vpop.f32.mrb[8].mxu0 }
 0x3ae   : > { %v1000_v45 = vpop.f32.mrb[9].mxu0 }
 0x3af   : > { %v1750_v46 = vpop.f32.mrb[10].mxu0 }
 0x3b0   : > { %v1036_v47 = vpack.c.bf16 %v1750_v46, %v1749_v44  ;;  %v1003_v48 = vpop.f32.mrb[11].mxu0 }
 0x3b1   : > { %v1035_v49 = vpack.c.bf16 %v1003_v48, %v1000_v45 }
 0x3b3   : > { %1779 = vmatprep.mubr.bf16.mxu1 %v1035_v49 }
 0x3b4   : > { %1780 = vmatmul.mubr.bf16.gmra.mrb[8].mxu1 %v1036_v47 }
 0x3b5   : > { %v1753_v50 = vpop.f32.mrb[12].mxu0 }
 0x3b6   : > { %v1016_v51 = vpop.f32.mrb[13].mxu0 }
 0x3b7   : > { %v1754_v52 = vpop.f32.mrb[14].mxu0 }
 0x3b8   : > { %v1038_v53 = vpack.c.bf16 %v1754_v52, %v1753_v50  ;;  %v1019_v54 = vpop.f32.mrb[15].mxu0 }
 0x3b9   : > { %v1037_v55 = vpack.c.bf16 %v1019_v54, %v1016_v51 }
 0x3bb   : > { %1783 = vmatprep.mubr.bf16.mxu1 %v1037_v55 }
 0x3bc   : > { %1784 = vmatmul.mubr.bf16.gmra.mrb[12].mxu1 %v1038_v53 }
 0x477   : > { %v1773_v56 = vpop.f32.mrb[0].mxu1 }
 0x478   : > { %v1137_v57 = vpop.f32.mrb[1].mxu1  ;;  %1205 = vst [vmem:[#allocation11 + $0x10] sm:$0xff] (!%p1508_p6), %v1773_v56 }
 0x479   : > { %v1774_v58 = vpop.f32.mrb[2].mxu1  ;;  %1203 = vst [vmem:[#allocation11] sm:$0xff] (!%p1508_p6), %v1137_v57 }
 0x47a   : > { %v1140_v59 = vpop.f32.mrb[3].mxu1  ;;  %1206 = vst [vmem:[#allocation11 + $0x18] sm:$0xff] (!%p1508_p6), %v1774_v58 }
 0x47b   : > { %1204 = vst [vmem:[#allocation11 + $0x8] sm:$0xff] (!%p1508_p6), %v1140_v59 }
 0x47f   : > { %v2456_v60 = vpop.f32.mrb[4].mxu1 }
 0x480   : > { %v1153_v61 = vpop.f32.mrb[5].mxu1  ;;  %1209 = vst [vmem:[#allocation11 + $0x30] sm:$0xff] (!%p1508_p6), %v2456_v60 }
 0x481   : > { %v2458_v62 = vpop.f32.mrb[6].mxu1  ;;  %1207 = vst [vmem:[#allocation11 + $0x20] sm:$0xff] (!%p1508_p6), %v1153_v61 }
 0x482   : > { %v1156_v63 = vpop.f32.mrb[7].mxu1  ;;  %1210 = vst [vmem:[#allocation11 + $0x38] sm:$0xff] (!%p1508_p6), %v2458_v62 }
 0x483   : > { %1208 = vst [vmem:[#allocation11 + $0x28] sm:$0xff] (!%p1508_p6), %v1156_v63 }
 0x487   : > { %v2460_v0 = vpop.f32.mrb[8].mxu1 }
 0x488   : > { %v2462_v1 = vpop.f32.mrb[9].mxu1  ;;  %1213 = vst [vmem:[#allocation11 + $0x50] sm:$0xff] (!%p1508_p6), %v2460_v0 }
 0x489   : > { %v2464_v2 = vpop.f32.mrb[10].mxu1  ;;  %1211 = vst [vmem:[#allocation11 + $0x40] sm:$0xff] (!%p1508_p6), %v2462_v1 }
 0x48a   : > { %v2466_v3 = vpop.f32.mrb[11].mxu1  ;;  %1214 = vst [vmem:[#allocation11 + $0x58] sm:$0xff] (!%p1508_p6), %v2464_v2 }
 0x48b   : > { %1212 = vst [vmem:[#allocation11 + $0x48] sm:$0xff] (!%p1508_p6), %v2466_v3 }
 0x48c   : > { %1202 = sbr.rel (%p1508_p6) target bundleno = 1172 (0x494), region = 76 }
 0x48f   : > { %v2468_v5 = vpop.f32.mrb[12].mxu1 }
 0x490   : > { %v2470_v7 = vpop.f32.mrb[13].mxu1  ;;  %1217 = vst [vmem:[#allocation11 + $0x70] sm:$0xff] (!%p1508_p6), %v2468_v5 }
 0x491   : > { %v2472_v8 = vpop.f32.mrb[14].mxu1  ;;  %1215 = vst [vmem:[#allocation11 + $0x60] sm:$0xff] (!%p1508_p6), %v2470_v7 }
 0x492   : > { %v2474_v9 = vpop.f32.mrb[15].mxu1  ;;  %1218 = vst [vmem:[#allocation11 + $0x78] sm:$0xff] (!%p1508_p6), %v2472_v8 }
 0x493   : > { %1216 = vst [vmem:[#allocation11 + $0x68] sm:$0xff] %v2474_v9 }
 0x494 PF: > { %p1509_p10 = scmp.eq.s32.totalorder %s2115_s18, 1 }
 0x495   : > { %v1223_v4 = vmax.f32 (!%p1509_p10), %v1137_v57, 0.0  ;;  %v1224_v6 = vmax.f32 (!%p1509_p10), %v1140_v59, 0.0  ;;  %v1550_v10 = vld [vmem:[%s2381_s25] sm:$0xff] (!%p1509_p10)   ;;  %v1225_v11 = vmax.f32 (!%p1509_p10), %v1773_v56, 0.0  ;;  %v1226_v12 = vmax.f32 (!%p1509_p10), %v1774_v58, 0.0  ;;  %v1588_v13 = vld [vmem:[%s2381_s25 + $0x8] sm:$0xff] (!%p1509_p10)  }
 0x496   : > { %1222 = sbr.rel (%p1509_p10) target bundleno = 1192 (0x4a8), region = 80  ;;  %v1551_v14 = vunpack.c.l.bf16 (!%p1509_p10), %v1550_v10  ;;  %v1552_v15 = vunpack.c.h.bf16 (!%p1509_p10), %v1550_v10  ;;  %v1555_v16 = vunpack.c.l.bf16 (!%p1509_p10), %v1588_v13  ;;  %v1556_v17 = vunpack.c.h.bf16 (!%p1509_p10), %v1588_v13  ;;  %v1589_v18 = vld [vmem:[%s2381_s25 + $0x10] sm:$0xff] (!%p1509_p10)   ;;  %v1590_v23 = vld [vmem:[%s2381_s25 + $0x18] sm:$0xff] (!%p1509_p10)   ;;  %v1591_v28 = vld [vmem:[%s2381_s25 + $0x20] sm:$0xff] (!%p1509_p10)  }
 0x497   : > { %v1227_v19 = vmax.f32 (!%p1509_p10), %v1153_v61, 0.0  ;;  %v1228_v20 = vmax.f32 (!%p1509_p10), %v1156_v63, 0.0  ;;  %v1559_v21 = vunpack.c.l.bf16 (!%p1509_p10), %v1589_v18  ;;  %v1560_v22 = vunpack.c.h.bf16 (!%p1509_p10), %v1589_v18  ;;  %v1592_v37 = vld [vmem:[%s2381_s25 + $0x28] sm:$0xff] (!%p1509_p10)   ;;  %v1593_v46 = vld [vmem:[%s2381_s25 + $0x30] sm:$0xff] (!%p1509_p10)   ;;  %v1594_v51 = vld [vmem:[%s2381_s25 + $0x38] sm:$0xff] (!%p1509_p10)  }
 0x498   : > { %v1271_v24 = vmul.f32 (!%p1509_p10), %v1551_v14, %v1223_v4  ;;  %v1272_v25 = vmul.f32 (!%p1509_p10), %v1552_v15, %v1224_v6  ;;  %v1273_v26 = vmul.f32 (!%p1509_p10), %v1555_v16, %v1225_v11  ;;  %v1274_v27 = vmul.f32 (!%p1509_p10), %v1556_v17, %v1226_v12 }
 0x499   : > { %v1275_v29 = vmul.f32 (!%p1509_p10), %v1559_v21, %v1227_v19  ;;  %v1276_v30 = vmul.f32 (!%p1509_p10), %v1560_v22, %v1228_v20  ;;  %v1229_v31 = vmax.f32 (!%p1509_p10), %v2456_v60, 0.0  ;;  %v1230_v32 = vmax.f32 (!%p1509_p10), %v2458_v62, 0.0 }
 0x49a   : > { %v1287_v33 = vpack.c.bf16 (!%p1509_p10), %v1272_v25, %v1271_v24  ;;  %1307 = vst [vmem:[#allocation11] sm:$0xff] (!%p1509_p10), %v1271_v24  ;;  %1308 = vst [vmem:[#allocation11 + $0x8] sm:$0xff] (!%p1509_p10), %v1272_v25  ;;  %v1288_v34 = vpack.c.bf16 (!%p1509_p10), %v1274_v27, %v1273_v26  ;;  %v1563_v35 = vunpack.c.l.bf16 (!%p1509_p10), %v1590_v23  ;;  %v1564_v36 = vunpack.c.h.bf16 (!%p1509_p10), %v1590_v23 }
 0x49b   : > { %1309 = vst [vmem:[#allocation11 + $0x10] sm:$0xff] (!%p1509_p10), %v1273_v26  ;;  %1310 = vst [vmem:[#allocation11 + $0x18] sm:$0xff] (!%p1509_p10), %v1274_v27  ;;  %v1289_v38 = vpack.c.bf16 (!%p1509_p10), %v1276_v30, %v1275_v29  ;;  %v1231_v39 = vmax.f32 (!%p1509_p10), %v2462_v1, 0.0  ;;  %v1232_v40 = vmax.f32 (!%p1509_p10), %v2466_v3, 0.0  ;;  %v1567_v41 = vunpack.c.l.bf16 (!%p1509_p10), %v1591_v28 }
 0x49c   : > { %1311 = vst [vmem:[#allocation11 + $0x20] sm:$0xff] (!%p1509_p10), %v1275_v29  ;;  %1312 = vst [vmem:[#allocation11 + $0x28] sm:$0xff] (!%p1509_p10), %v1276_v30  ;;  %v1277_v42 = vmul.f32 (!%p1509_p10), %v1563_v35, %v1229_v31  ;;  %v1278_v43 = vmul.f32 (!%p1509_p10), %v1564_v36, %v1230_v32  ;;  %v1568_v44 = vunpack.c.h.bf16 (!%p1509_p10), %v1591_v28  ;;  %v1233_v45 = vmax.f32 (!%p1509_p10), %v2460_v0, 0.0 }
 0x49d   : > { %1299 = vst [vmem:[#allocation2] sm:$0xff] %v1287_v33  ;;  %1300 = vst [vmem:[#allocation2 + $0x8] sm:$0xff] %v1288_v34  ;;  %v1279_v47 = vmul.f32 %v1567_v41, %v1231_v39  ;;  %v1234_v48 = vmax.f32 %v2464_v2, 0.0  ;;  %v1571_v49 = vunpack.c.l.bf16 %v1592_v37  ;;  %v1572_v50 = vunpack.c.h.bf16 %v1592_v37 }
 0x49e   : > { %1301 = vst [vmem:[#allocation2 + $0x10] sm:$0xff] %v1289_v38  ;;  %v1290_v52 = vpack.c.bf16 %v1278_v43, %v1277_v42  ;;  %1313 = vst [vmem:[#allocation11 + $0x30] sm:$0xff] %v1277_v42  ;;  %v1280_v53 = vmul.f32 %v1568_v44, %v1232_v40  ;;  %v1235_v54 = vmax.f32 %v2470_v7, 0.0  ;;  %v1236_v55 = vmax.f32 %v2474_v9, 0.0 }
 0x49f   : > { %1314 = vst [vmem:[#allocation11 + $0x38] sm:$0xff] %v1278_v43  ;;  %1315 = vst [vmem:[#allocation11 + $0x40] sm:$0xff] %v1279_v47  ;;  %v1281_v56 = vmul.f32 %v1571_v49, %v1233_v45  ;;  %v1282_v57 = vmul.f32 %v1572_v50, %v1234_v48  ;;  %v1575_v58 = vunpack.c.l.bf16 %v1593_v46  ;;  %v1576_v59 = vunpack.c.h.bf16 %v1593_v46 }
 0x4a0   : > { %1302 = vst [vmem:[#allocation2 + $0x18] sm:$0xff] %v1290_v52  ;;  %v1291_v60 = vpack.c.bf16 %v1280_v53, %v1279_v47  ;;  %1316 = vst [vmem:[#allocation11 + $0x48] sm:$0xff] %v1280_v53  ;;  %v1237_v61 = vmax.f32 %v2468_v5, 0.0  ;;  %v1238_v62 = vmax.f32 %v2472_v8, 0.0  ;;  %v1579_v63 = vunpack.c.l.bf16 %v1594_v51 }
 0x4a1   : > { %v1292_v0 = vpack.c.bf16 %v1282_v57, %v1281_v56  ;;  %1317 = vst [vmem:[#allocation11 + $0x50] sm:$0xff] %v1281_v56  ;;  %1318 = vst [vmem:[#allocation11 + $0x58] sm:$0xff] %v1282_v57  ;;  %v1283_v1 = vmul.f32 %v1575_v58, %v1235_v54  ;;  %v1284_v2 = vmul.f32 %v1576_v59, %v1236_v55  ;;  %v1580_v3 = vunpack.c.h.bf16 %v1594_v51 }
 0x4a2   : > { %1303 = vst [vmem:[#allocation2 + $0x20] sm:$0xff] %v1291_v60  ;;  %v1285_v7 = vmul.f32 %v1579_v63, %v1237_v61 }
 0x4a3   : > { %1304 = vst [vmem:[#allocation2 + $0x28] sm:$0xff] %v1292_v0  ;;  %v1293_v9 = vpack.c.bf16 %v1284_v2, %v1283_v1  ;;  %1319 = vst [vmem:[#allocation11 + $0x60] sm:$0xff] %v1283_v1  ;;  %v1286_v4 = vmul.f32 %v1580_v3, %v1238_v62 }
 0x4a4   : > { %1320 = vst [vmem:[#allocation11 + $0x68] sm:$0xff] %v1284_v2  ;;  %1321 = vst [vmem:[#allocation11 + $0x70] sm:$0xff] %v1285_v7 }
 0x4a5   : > { %1305 = vst [vmem:[#allocation2 + $0x30] sm:$0xff] %v1293_v9  ;;  %v1294_v6 = vpack.c.bf16 %v1286_v4, %v1285_v7  ;;  %1322 = vst [vmem:[#allocation11 + $0x78] sm:$0xff] %v1286_v4 }
 0x4a7   : > { %1306 = vst [vmem:[#allocation2 + $0x38] sm:$0xff] %v1294_v6 }
 0x4a8 PF: > { %p1822_p11 = scmp.eq.s32.totalorder %s2188_s21, 1  ;;  %s2131_s18 = smov [#allocation11]  }
 0x4a9   : > { %s1332_s26 = sshll.u32 %s2131_s18, 4  ;;  %s1333_s26 = int_to_ptr.vmem [resolvable:$true] %s1332_s26 }
 0x4aa   : > { %s2035_s27 = scalar_lea.vmem %s1333_s26, 2048  ;;  %p2042_p13 = scmp.lt.s32.totalorder %s1333_s26, %s1333_s26 }
 0x4ab   : > { %p2036_p8 = scmp.ne.s32.totalorder %s1333_s26, %s2035_s27  ;;  %p2043_p5 = scmp.lt.s32.totalorder %s2035_s27, %s2035_s27 }
 0x4ad   : > { %p2037_p1 = pnand %p2036_p8, %p1822_p11  ;;  %p2044_p7 = por %p2043_p5, %p2042_p13 }
 0x4af   : > { %p2038_p4 = pneg %p2037_p1 }
 0x4b1   : > { %p2045_p0 = pnand %p2044_p7, %p2038_p4 }
 0x4b3   : > { %2048 = shalt.err (!%p2045_p0)
}
 0x4b4   : > { %s2049_s7 = scalar_lea.hbm %s2551_s4, 2048 }
 0x4b5   : > { %p2050_p12 = scmp.ne.s32.totalorder %s2551_s4, %s2049_s7  ;;  %p2055_p3 = scmp.lt.u32.totalorder %s2049_s7, %s2551_s4 }
 0x4b7   : > { %p2051_p2 = pnand %p2050_p12, %p1822_p11 }
 0x4b9   : > { %p2052_p9 = pneg %p2051_p2 }
 0x4bb   : > { %p2057_p6 = pnand %p2055_p3, %p2052_p9 }
 0x4bd   : > { %2060 = shalt.err (!%p2057_p6)
}
 0x4be   : > { %s2132_s30 = smov 128   ;;  %s2133_s28 = smov 8  }
 0x4bf   : > { %1800 = dma.vmem_to_hbm [thread:$0]  (%p1822_p11), %s1333_s26, 2048, %s2551_s4, [#allocation6], %s2132_s30, %s2132_s30, %s2133_s28  }
 0x4c0   : > { %2098 = dma.done.wait (%p1822_p11), [#allocation6], 2048  }
 0x4c1   : > { %2100 = vsyncadd (%p1822_p11), [#allocation6], 4294965248 }
 0x4c2 PF: > { %s17_s20 = sadd.s32 1, %s2123_s20   ;;  %s2583_s24 = sld [smem:[#allocation16_spill]] }
 0x4c3   : > { %p14_p10 = scmp.ge.s32.totalorder %s17_s20, 4   ;;  %s2584_s15 = smov %s2107_s16 }
 0x4c4   : > { %s2585_s16 = smov %s2111_s17  ;;  %s2586_s17 = smov %s2267_s14 }
 0x4c5   : > { %s2587_s18 = smov %s2119_s19  ;;  %16 = sbr.rel (!%p14_p10) target bundleno = 8 (0x8), region = 123 }
 0x4c8   : > { %s2588_s19 = smov %s2583_s24 }
 0x4cc   :  { %1348 = vsyncpa [#allocation5], 1 }
 0x4cd   :  { %1350 = vsyncpa [#allocation5 + $0x1], 1 }
 0x4ce   :  { %1351 = vsyncpa [#allocation8], 1 }
 0x4cf   :  { %1352 = vsyncpa [#allocation6], 1 }
 0x4d0   :  { %1354 = vsyncpa [#allocation6 + $0x1], 1 }

</bundles_post_ra>
